<compile_context>
chip_gen: v7x
topology: tpu7x:2x2x1
jax: 0.10.0
libtpu: 0.0.40
codegen_flags: <defaults>
</compile_context>

<pallas_src>
import functools
import math

import jax
import jax.numpy as jnp
from jax.experimental import pallas as pl
from jax.experimental.pallas import tpu as pltpu


# ----------------------------------------------------------------------------
# Pallas kernel: fused per-row RMS normalization
# ----------------------------------------------------------------------------
def _rmsnorm_kernel(g_ref, x_ref, o_ref, *, inv_dim, eps2):
    # g_ref: (1,) in SMEM.  x_ref / o_ref: (tile_n, Dp) in VMEM.
    x = x_ref[...].astype(jnp.float32)
    # mean(x^2) over the *true* feature dim (padded lanes are zero).
    ms = jnp.sum(x * x, axis=-1, keepdims=True) * inv_dim        # (tile_n, 1)
    # max(sqrt(ms), eps) == sqrt(max(ms, eps^2)); rsqrt runs on the EUP slot.
    inv = g_ref[0] * jax.lax.rsqrt(jnp.maximum(ms, eps2))        # (tile_n, 1)
    o_ref[...] = (x * inv).astype(o_ref.dtype)


def _round_up(v, m):
    return (v + m - 1) // m * m


def _choose_tile_n(n_rows, d_padded, itemsize, *, max_tile=4096,
                   block_bytes=6 << 20):
    """Row tile: large (HBM-BW bound), dtype-sublane aligned, VMEM-budgeted."""
    sub = {4: 8, 2: 16, 1: 32}.get(itemsize, 8)          # min sublane tile
    row_bytes = max(1, d_padded * itemsize)
    rows_by_vmem = max(sub, (block_bytes // row_bytes) // sub * sub)
    cap = min(max_tile, rows_by_vmem)
    if n_rows <= cap:
        if n_rows >= 1024:
            # Split in two only when each half keeps >= 512 rows: lets the v7x
            # megacore shard the row axis; near-free on single-TC v5e/v6e.
            return _round_up(pl.cdiv(n_rows, 2), sub)
        return n_rows                                    # one full-extent block
    return cap


# ----------------------------------------------------------------------------
# RMSNorm forward
# ----------------------------------------------------------------------------
def rmsnorm_forward(x, g, *, eps=1e-8):
    """x: (..., D) any float dtype (f32/bf16), g: scalar gain ((1,) or ()).

    Returns same shape/dtype as x.  Math is f32 inside the kernel.
    """
    shape = x.shape
    d = shape[-1]
    n_rows = math.prod(shape[:-1])
    itemsize = jnp.dtype(x.dtype).itemsize

    # Keep the output lane-dense: pad the feature dim to a multiple of 128.
    dp = max(128, _round_up(d, 128))
    x2d = x.reshape(n_rows, d)
    if dp != d:
        x2d = jnp.pad(x2d, ((0, 0), (0, dp - d)))        # zeros: row sums unchanged

    g1 = jnp.asarray(g, dtype=jnp.float32).reshape(1)

    tile_n = _choose_tile_n(n_rows, dp, itemsize)
    grid = (pl.cdiv(n_rows, tile_n),)

    # Double-buffered input + output blocks, plus headroom; safe on v7x (64 MiB
    # physical VMEM) and raises v5e's 16 MiB scoped default when needed.
    blk_bytes = tile_n * dp * itemsize
    vmem_limit = min(max(4 * blk_bytes + (2 << 20), 32 << 20), 48 << 20)

    kernel = functools.partial(
        _rmsnorm_kernel, inv_dim=1.0 / float(d), eps2=float(eps) ** 2)

    cost = pl.CostEstimate(
        flops=3 * n_rows * d,
        transcendentals=n_rows,
        bytes_accessed=2 * n_rows * dp * itemsize + 4,
    )

    y2d = pl.pallas_call(
        kernel,
        out_shape=jax.ShapeDtypeStruct((n_rows, dp), x.dtype),
        grid=grid,
        in_specs=[
            pl.BlockSpec(memory_space=pltpu.MemorySpace.SMEM),    # g (scalar)
            pl.BlockSpec((tile_n, dp), lambda i: (i, 0)),         # x row-tile
        ],
        out_specs=pl.BlockSpec((tile_n, dp), lambda i: (i, 0)),
        compiler_params=pltpu.CompilerParams(
            dimension_semantics=("parallel",),
            vmem_limit_bytes=int(vmem_limit),
        ),
        cost_estimate=cost,
    )(g1, x2d)

    if dp != d:
        y2d = y2d[:, :d]
    return y2d.reshape(shape)


# ----------------------------------------------------------------------------
# Pure-JAX reference (matches torch: norm(dim=-1)*dim**-0.5, clamp, * g)
# ----------------------------------------------------------------------------
def rmsnorm_reference(x, g, *, eps=1e-8):
    xf = x.astype(jnp.float32)
    d = x.shape[-1]
    norm = jnp.sqrt(jnp.sum(xf * xf, axis=-1, keepdims=True)) * (d ** -0.5)
    y = xf / jnp.maximum(norm, eps) * jnp.asarray(g, jnp.float32).reshape(())
    return y.astype(x.dtype)


# ----------------------------------------------------------------------------
# Main
# ----------------------------------------------------------------------------
if __name__ == "__main__":
    # Shapes consistent with RMSNorm over a feature dim: (b, t, s, dim).
    b, t, s, dim = 2, 8, 16, 128
    eps = 1e-8

    key = jax.random.PRNGKey(0)
    kx, kg = jax.random.split(key)
    x = jax.random.normal(kx, (b, t, s, dim), dtype=jnp.float32)
    # Scalar gain (PyTorch init is ones(1); use a non-trivial deterministic value).
    g = jax.random.uniform(kg, (1,), minval=0.5, maxval=1.5, dtype=jnp.float32)

    fwd = jax.jit(functools.partial(rmsnorm_forward, eps=eps))

    # f32 path
    y = fwd(x, g)
    jax.block_until_ready(y)
    y_ref = rmsnorm_reference(x, g, eps=eps)
    assert y.shape == x.shape and y.dtype == x.dtype
    assert jnp.allclose(y, y_ref, atol=2e-5, rtol=2e-5)

    # bf16 I/O path (halved HBM traffic; f32 math inside the kernel)
    x_bf16 = x.astype(jnp.bfloat16)
    y_bf16 = fwd(x_bf16, g)
    jax.block_until_ready(y_bf16)
    y_bf16_ref = rmsnorm_reference(x_bf16, g, eps=eps)
    assert y_bf16.shape == x_bf16.shape and y_bf16.dtype == jnp.bfloat16
    assert jnp.allclose(y_bf16.astype(jnp.float32),
                        y_bf16_ref.astype(jnp.float32), atol=2e-2, rtol=2e-2)

    print("KERNEL_OK")
</pallas_src>

<mosaic_0001>
module attributes {stable_mosaic.version = 11 : i64} {
  func.func @_rmsnorm_kernel(%arg0: i32, %arg1: memref<1xf32, #tpu.memory_space<smem>>, %arg2: memref<256x128xf32, #tpu.memory_space<vmem>>, %arg3: memref<256x128xf32, #tpu.memory_space<vmem>>) attributes {dimension_semantics = [#tpu.dimension_semantics<parallel>], iteration_bounds = array<i64: 1>, scalar_prefetch = 0 : i64, scratch_operands = 0 : i64, tpu.core_type = #tpu.core_type<tc>, window_params = [{transform_indices = @transform_0, window_bounds = array<i64: 1>}, {transform_indices = @transform_1, window_bounds = array<i64: 256, 128>}, {transform_indices = @transform_2, window_bounds = array<i64: 256, 128>}]} {
    %c0 = arith.constant 0 : index
    %c0_0 = arith.constant 0 : index
    %0 = vector.load %arg2[%c0, %c0_0] : memref<256x128xf32, #tpu.memory_space<vmem>>, vector<256x128xf32>
    %1 = arith.mulf %0, %0 : vector<256x128xf32>
    %cst = arith.constant dense<0.000000e+00> : vector<256xf32>
    %2 = vector.multi_reduction <add>, %1, %cst [1] : vector<256x128xf32> to vector<256xf32>
    %3 = vector.shape_cast %2 : vector<256xf32> to vector<256x1xf32>
    %cst_1 = arith.constant 7.812500e-03 : f32
    %4 = vector.broadcast %cst_1 : f32 to vector<256x1xf32>
    %5 = arith.mulf %3, %4 : vector<256x1xf32>
    %c0_2 = arith.constant 0 : index
    %6 = memref.load %arg1[%c0_2] : memref<1xf32, #tpu.memory_space<smem>>
    %cst_3 = arith.constant 1.000000e-16 : f32
    %7 = vector.broadcast %cst_3 : f32 to vector<256x1xf32>
    %8 = arith.maximumf %5, %7 : vector<256x1xf32>
    %9 = math.rsqrt %8 : vector<256x1xf32>
    %10 = vector.broadcast %6 : f32 to vector<256x1xf32>
    %11 = arith.mulf %10, %9 : vector<256x1xf32>
    %12 = vector.broadcast %11 : vector<256x1xf32> to vector<256x128xf32>
    %13 = arith.mulf %0, %12 : vector<256x128xf32>
    %c0_4 = arith.constant 0 : index
    %c0_5 = arith.constant 0 : index
    %14 = vector.load %arg3[%c0_4, %c0_5] : memref<256x128xf32, #tpu.memory_space<vmem>>, vector<256x128xf32>
    tpu.vector_store %arg3[%c0_4, %c0_5], %13 {strides = array<i32>} : memref<256x128xf32, #tpu.memory_space<vmem>>, vector<256x128xf32>,
    return
  }
  func.func @transform_0(%arg0: i32) -> i32 {
    %c0_i32 = arith.constant 0 : i32
    %c0_i32_0 = arith.constant 0 : i32
    return %c0_i32 : i32
  }
  func.func @transform_1(%arg0: i32) -> (i32, i32) {
    %c0_i32 = arith.constant 0 : i32
    %c0_i32_0 = arith.constant 0 : i32
    return %arg0, %c0_i32 : i32, i32
  }
  func.func @transform_2(%arg0: i32) -> (i32, i32) {
    %c0_i32 = arith.constant 0 : i32
    %c0_i32_0 = arith.constant 0 : i32
    return %arg0, %c0_i32 : i32, i32
  }
}

</mosaic_0001>

<bundles_post_ra>
// kernel: rmsnorm_forward.1
= control target key start
LH: loop header
LB: loop body
LE: loop exit
PB: predicated region body
PF: predicated region fallthrough
CT: control target
= control target key end

     0   :  { %8 = vsyncpa [#allocation4], 0  ;;  %s728_s0 = inlined_call_operand.<no memory space> [shape: f32[1], index: 0, kind: input, shape index: {}]   ;;  %s729_s1 = inlined_call_operand.hbm [shape: f32[256,128], index: 1, kind: input, shape index: {}]   ;;  %s730_s2 = inlined_call_operand.hbm [shape: f32[256,128], index: 2, kind: output, shape index: {}]  }
   0x1   :  { %9 = vsyncpa [#allocation5], 0  ;;  %s482_s9 = smov [#allocation3]   ;;  %s434_s13 = scalar_lea.hbm %s729_s1, 4096 }
   0x2   :  { %s17_s10 = sshll.u32 %s482_s9, 4  ;;  %p435_p0 = scmp.ne.s32.totalorder %s729_s1, %s434_s13  ;;  %s18_s10 = int_to_ptr.vmem [resolvable:$true] %s17_s10 }
   0x3   :  { %p438_p1 = scmp.lt.u32.totalorder %s434_s13, %s729_s1 }
   0x5   :  { %p440_p2 = pnand %p438_p1, %p435_p0 }
   0x7   :  { %443 = shalt.err (!%p440_p2)
}
   0x8   :  { %s444_s18 = scalar_lea.vmem %s18_s10, 4096  ;;  %p449_p4 = scmp.lt.s32.totalorder %s18_s10, %s18_s10 }
   0x9   :  { %p445_p3 = scmp.ne.s32.totalorder %s18_s10, %s444_s18  ;;  %p450_p5 = scmp.lt.s32.totalorder %s444_s18, %s444_s18 }
   0xb   :  { %p451_p6 = por %p450_p5, %p449_p4 }
   0xd   :  { %p452_p7 = pnand %p451_p6, %p445_p3 }
   0xf   :  { %455 = shalt.err (!%p452_p7)
}
  0x10   :  { %s483_s19 = smov 128   ;;  %s484_s20 = smov 8  }
  0x11   :  { %23 = dma.hbm_to_vmem [thread:$0]  %s729_s1, 4096, %s18_s10, [#allocation4], %s483_s19, %s483_s19, %s484_s20  }
  0x12   :  { %478 = dma.done.wait [#allocation4], 4096  }
  0x13   :  { %479 = vsyncadd [#allocation4], 4294963200  ;;  %v516_v0 = vld [vmem:[#allocation3 + $0x10] sm:$0xff]  ;;  %v518_v1 = vld [vmem:[#allocation3] sm:$0xff] }
  0x14   :  { %v520_v2 = vld [vmem:[#allocation3 + $0x18] sm:$0xff]  ;;  %v61_v3 = vmul.f32 %v516_v0, %v516_v0  ;;  %v59_v4 = vmul.f32 %v518_v1, %v518_v1  ;;  %v526_v5 = vld [vmem:[#allocation3 + $0x8] sm:$0xff]  ;;  %v534_v9 = vld [vmem:[#allocation3 + $0x20] sm:$0xff] }
  0x15   :  { %v62_v6 = vmul.f32 %v520_v2, %v520_v2  ;;  %v60_v7 = vmul.f32 %v526_v5, %v526_v5  ;;  %v532_v8 = vld [vmem:[#allocation3 + $0x28] sm:$0xff]  ;;  %v63_v11 = vmul.f32 %v534_v9, %v534_v9  ;;  %v540_v12 = vld [vmem:[#allocation3 + $0x38] sm:$0xff]  ;;  %v542_v13 = vld [vmem:[#allocation3 + $0x30] sm:$0xff] }
  0x16   :  { %95 = vadd.xlane.f32.xlu1 %v61_v3  ;;  %91 = vadd.xlane.f32.xlu0 %v59_v4  ;;  %v64_v10 = vmul.f32 %v532_v8, %v532_v8  ;;  %v66_v14 = vmul.f32 %v540_v12, %v540_v12  ;;  %v65_v15 = vmul.f32 %v542_v13, %v542_v13  ;;  %v548_v16 = vld [vmem:[#allocation3 + $0x48] sm:$0xff]  ;;  %v550_v17 = vld [vmem:[#allocation3 + $0x40] sm:$0xff]  ;;  %v556_v20 = vld [vmem:[#allocation3 + $0x58] sm:$0xff] }
  0x17   :  { %v68_v18 = vmul.f32 %v548_v16, %v548_v16  ;;  %v67_v19 = vmul.f32 %v550_v17, %v550_v17  ;;  %v558_v21 = vld [vmem:[#allocation3 + $0x50] sm:$0xff]  ;;  %v70_v22 = vmul.f32 %v556_v20, %v556_v20  ;;  %v564_v24 = vld [vmem:[#allocation3 + $0x68] sm:$0xff]  ;;  %v566_v25 = vld [vmem:[#allocation3 + $0x60] sm:$0xff] }
  0x18   :  { %v69_v23 = vmul.f32 %v558_v21, %v558_v21  ;;  %v72_v26 = vmul.f32 %v564_v24, %v564_v24  ;;  %v71_v27 = vmul.f32 %v566_v25, %v566_v25  ;;  %v572_v28 = vld [vmem:[#allocation3 + $0x78] sm:$0xff]  ;;  %v574_v29 = vld [vmem:[#allocation3 + $0x70] sm:$0xff]  ;;  %v580_v32 = vld [vmem:[#allocation3 + $0x88] sm:$0xff] }
  0x19   :  { %v74_v30 = vmul.f32 %v572_v28, %v572_v28  ;;  %v73_v31 = vmul.f32 %v574_v29, %v574_v29  ;;  %v582_v33 = vld [vmem:[#allocation3 + $0x80] sm:$0xff]  ;;  %v76_v34 = vmul.f32 %v580_v32, %v580_v32  ;;  %v588_v36 = vld [vmem:[#allocation3 + $0x98] sm:$0xff]  ;;  %v590_v37 = vld [vmem:[#allocation3 + $0x90] sm:$0xff] }
  0x1a   :  { %97 = vadd.xlane.f32.xlu1 %v62_v6  ;;  %93 = vadd.xlane.f32.xlu0 %v60_v7  ;;  %v75_v35 = vmul.f32 %v582_v33, %v582_v33  ;;  %v78_v38 = vmul.f32 %v588_v36, %v588_v36  ;;  %v77_v39 = vmul.f32 %v590_v37, %v590_v37  ;;  %v596_v40 = vld [vmem:[#allocation3 + $0xa8] sm:$0xff]  ;;  %v598_v41 = vld [vmem:[#allocation3 + $0xa0] sm:$0xff]  ;;  %v604_v44 = vld [vmem:[#allocation3 + $0xb8] sm:$0xff] }
  0x1b   :  { %v80_v42 = vmul.f32 %v596_v40, %v596_v40  ;;  %v79_v43 = vmul.f32 %v598_v41, %v598_v41  ;;  %v606_v45 = vld [vmem:[#allocation3 + $0xb0] sm:$0xff]  ;;  %v82_v46 = vmul.f32 %v604_v44, %v604_v44  ;;  %v612_v48 = vld [vmem:[#allocation3 + $0xc8] sm:$0xff]  ;;  %v614_v49 = vld [vmem:[#allocation3 + $0xc0] sm:$0xff] }
  0x1c   :  { %v81_v47 = vmul.f32 %v606_v45, %v606_v45  ;;  %v84_v50 = vmul.f32 %v612_v48, %v612_v48  ;;  %v83_v51 = vmul.f32 %v614_v49, %v614_v49  ;;  %v620_v52 = vld [vmem:[#allocation3 + $0xd8] sm:$0xff]  ;;  %v622_v53 = vld [vmem:[#allocation3 + $0xd0] sm:$0xff]  ;;  %v628_v56 = vld [vmem:[#allocation3 + $0xe8] sm:$0xff] }
  0x1d   :  { %v86_v54 = vmul.f32 %v620_v52, %v620_v52  ;;  %v85_v55 = vmul.f32 %v622_v53, %v622_v53  ;;  %v630_v57 = vld [vmem:[#allocation3 + $0xe0] sm:$0xff]  ;;  %v88_v58 = vmul.f32 %v628_v56, %v628_v56  ;;  %v636_v60 = vld [vmem:[#allocation3 + $0xf8] sm:$0xff]  ;;  %v638_v61 = vld [vmem:[#allocation3 + $0xf0] sm:$0xff] }
  0x1e   :  { %101 = vadd.xlane.f32.xlu1 %v64_v10  ;;  %99 = vadd.xlane.f32.xlu0 %v63_v11  ;;  %v87_v59 = vmul.f32 %v630_v57, %v630_v57  ;;  %v90_v62 = vmul.f32 %v636_v60, %v636_v60  ;;  %v89_v63 = vmul.f32 %v638_v61, %v638_v61 }
  0x22   :  { %105 = vadd.xlane.f32.xlu1 %v66_v14  ;;  %103 = vadd.xlane.f32.xlu0 %v65_v15 }
  0x26   :  { %109 = vadd.xlane.f32.xlu1 %v68_v18  ;;  %107 = vadd.xlane.f32.xlu0 %v67_v19 }
  0x2a   :  { %113 = vadd.xlane.f32.xlu1 %v70_v22  ;;  %111 = vadd.xlane.f32.xlu0 %v69_v23 }
  0x2e   :  { %117 = vadd.xlane.f32.xlu1 %v72_v26  ;;  %115 = vadd.xlane.f32.xlu0 %v71_v27 }
  0x32   :  { %121 = vadd.xlane.f32.xlu1 %v74_v30  ;;  %119 = vadd.xlane.f32.xlu0 %v73_v31 }
  0x36   :  { %125 = vadd.xlane.f32.xlu1 %v76_v34  ;;  %123 = vadd.xlane.f32.xlu0 %v75_v35 }
  0x3a   :  { %129 = vadd.xlane.f32.xlu1 %v78_v38  ;;  %127 = vadd.xlane.f32.xlu0 %v77_v39 }
  0x3e   :  { %133 = vadd.xlane.f32.xlu1 %v80_v42  ;;  %131 = vadd.xlane.f32.xlu0 %v79_v43  ;;  %v647_v42 = vstv %s728_s0  ;;  %s485_s0 = smov [#allocation6]  }
  0x3f   :  { %s354_s24 = sshll.u32 %s485_s0, 4  ;;  %s355_s24 = int_to_ptr.vmem [resolvable:$true] %s354_s24 }
  0x40   :  { %s456_s25 = scalar_lea.vmem %s355_s24, 4096  ;;  %p461_p9 = scmp.lt.s32.totalorder %s355_s24, %s355_s24 }
  0x41   :  { %p457_p8 = scmp.ne.s32.totalorder %s355_s24, %s456_s25  ;;  %p462_p10 = scmp.lt.s32.totalorder %s456_s25, %s456_s25 }
  0x42   :  { %137 = vadd.xlane.f32.xlu1 %v82_v46  ;;  %135 = vadd.xlane.f32.xlu0 %v81_v47 }
  0x43   :  { %p463_p11 = por %p462_p10, %p461_p9 }
  0x45   :  { %p464_p12 = pnand %p463_p11, %p457_p8 }
  0x46   :  { %141 = vadd.xlane.f32.xlu1 %v84_v50  ;;  %139 = vadd.xlane.f32.xlu0 %v83_v51 }
  0x4a   :  { %145 = vadd.xlane.f32.xlu1 %v86_v54  ;;  %143 = vadd.xlane.f32.xlu0 %v85_v55 }
  0x4e   :  { %149 = vadd.xlane.f32.xlu1 %v88_v58  ;;  %147 = vadd.xlane.f32.xlu0 %v87_v59 }
  0x52   :  { %153 = vadd.xlane.f32.xlu1 %v90_v62  ;;  %151 = vadd.xlane.f32.xlu0 %v89_v63 }
  0xa3   :  { %v96_v3 = vpop.xlane.xlu1 %95  ;;  %v92_v4 = vpop.xlane.xlu0 %91 }
  0xa4   :  { %v157_v6 = vmul.f32 0.0078125, %v96_v3  ;;  %v155_v7 = vmul.f32 0.0078125, %v92_v4 }
  0xa6   :  { %v190_v10 = vmax.f32 %v157_v6, 1e-16  ;;  %v188_v11 = vmax.f32 %v155_v7, 1e-16 }
  0xa7   :  { %v98_v14 = vpop.xlane.xlu1 %97  ;;  %v94_v15 = vpop.xlane.xlu0 %93 }
  0xa8   :  { %370 = vrsqrt.f32 %v190_v10  ;;  %v158_v18 = vmul.f32 0.0078125, %v98_v14  ;;  %v156_v19 = vmul.f32 0.0078125, %v94_v15 }
  0xa9   :  { %372 = vrsqrt.f32 %v188_v11 }
  0xaa   :  { %v191_v22 = vmax.f32 %v158_v18, 1e-16  ;;  %v189_v23 = vmax.f32 %v156_v19, 1e-16 }
  0xab   :  { %v102_v26 = vpop.xlane.xlu1 %101  ;;  %v100_v27 = vpop.xlane.xlu0 %99 }
  0xac   :  { %374 = vrsqrt.f32 %v191_v22  ;;  %v160_v30 = vmul.f32 0.0078125, %v102_v26  ;;  %v159_v31 = vmul.f32 0.0078125, %v100_v27 }
  0xad   :  { %376 = vrsqrt.f32 %v189_v23 }
  0xae   :  { %v193_v34 = vmax.f32 %v160_v30, 1e-16  ;;  %v192_v35 = vmax.f32 %v159_v31, 1e-16 }
  0xaf   :  { %v106_v38 = vpop.xlane.xlu1 %105  ;;  %v104_v39 = vpop.xlane.xlu0 %103 }
  0xb0   :  { %378 = vrsqrt.f32 %v193_v34  ;;  %v162_v43 = vmul.f32 0.0078125, %v106_v38  ;;  %v161_v46 = vmul.f32 0.0078125, %v104_v39 }
  0xb1   :  { %380 = vrsqrt.f32 %v192_v35 }
  0xb2   :  { %v371_v47 = vpop.eup %370  ;;  %v195_v50 = vmax.f32 %v162_v43, 1e-16  ;;  %v194_v51 = vmax.f32 %v161_v46, 1e-16 }
  0xb3   :  { %v373_v54 = vpop.eup %372  ;;  %v255_v55 = vmul.f32 %v371_v47, %v647_v42  ;;  %v110_v58 = vpop.xlane.xlu1 %109 }
  0xb4   :  { %v108_v59 = vpop.xlane.xlu0 %107  ;;  %v253_v62 = vmul.f32 %v373_v54, %v647_v42  ;;  %382 = vrsqrt.f32 %v195_v50  ;;  %v164_v63 = vmul.f32 0.0078125, %v110_v58 }
  0xb5   :  { %v163_v3 = vmul.f32 0.0078125, %v108_v59  ;;  %v287_v4 = vmul.f32 %v255_v55, %v516_v0  ;;  %384 = vrsqrt.f32 %v194_v51 }
  0xb6   :  { %v375_v6 = vpop.eup %374  ;;  %v285_v7 = vmul.f32 %v253_v62, %v518_v1  ;;  %v197_v10 = vmax.f32 %v164_v63, 1e-16 }
  0xb7   :  { %v196_v11 = vmax.f32 %v163_v3, 1e-16  ;;  %v377_v14 = vpop.eup %376  ;;  %319 = vst [vmem:[#allocation6 + $0x10] sm:$0xff] %v287_v4  ;;  %v256_v15 = vmul.f32 %v375_v6, %v647_v42  ;;  %v114_v18 = vpop.xlane.xlu1 %113 }
  0xb8   :  { %v112_v19 = vpop.xlane.xlu0 %111  ;;  %317 = vst [vmem:[#allocation6] sm:$0xff] %v285_v7  ;;  %v254_v22 = vmul.f32 %v377_v14, %v647_v42  ;;  %386 = vrsqrt.f32 %v197_v10  ;;  %v166_v23 = vmul.f32 0.0078125, %v114_v18 }
  0xb9   :  { %v165_v26 = vmul.f32 0.0078125, %v112_v19  ;;  %v288_v0 = vmul.f32 %v256_v15, %v520_v2  ;;  %388 = vrsqrt.f32 %v196_v11 }
  0xba   :  { %v379_v27 = vpop.eup %378  ;;  %v286_v1 = vmul.f32 %v254_v22, %v526_v5  ;;  %v199_v30 = vmax.f32 %v166_v23, 1e-16 }
  0xbb   :  { %v198_v31 = vmax.f32 %v165_v26, 1e-16  ;;  %v381_v34 = vpop.eup %380  ;;  %320 = vst [vmem:[#allocation6 + $0x18] sm:$0xff] %v288_v0  ;;  %v258_v35 = vmul.f32 %v379_v27, %v647_v42  ;;  %v118_v38 = vpop.xlane.xlu1 %117 }
  0xbc   :  { %v116_v39 = vpop.xlane.xlu0 %115  ;;  %318 = vst [vmem:[#allocation6 + $0x8] sm:$0xff] %v286_v1  ;;  %v257_v43 = vmul.f32 %v381_v34, %v647_v42  ;;  %390 = vrsqrt.f32 %v199_v30  ;;  %v168_v46 = vmul.f32 0.0078125, %v118_v38 }
  0xbd   :  { %v167_v47 = vmul.f32 0.0078125, %v116_v39  ;;  %v290_v2 = vmul.f32 %v258_v35, %v532_v8  ;;  %392 = vrsqrt.f32 %v198_v31 }
  0xbe   :  { %v383_v50 = vpop.eup %382  ;;  %v289_v5 = vmul.f32 %v257_v43, %v534_v9  ;;  %v201_v51 = vmax.f32 %v168_v46, 1e-16 }
  0xbf   :  { %v200_v54 = vmax.f32 %v167_v47, 1e-16  ;;  %v385_v55 = vpop.eup %384  ;;  %322 = vst [vmem:[#allocation6 + $0x28] sm:$0xff] %v290_v2  ;;  %v260_v58 = vmul.f32 %v383_v50, %v647_v42  ;;  %v122_v59 = vpop.xlane.xlu1 %121 }
  0xc0   :  { %v120_v62 = vpop.xlane.xlu0 %119  ;;  %321 = vst [vmem:[#allocation6 + $0x20] sm:$0xff] %v289_v5  ;;  %v259_v63 = vmul.f32 %v385_v55, %v647_v42  ;;  %394 = vrsqrt.f32 %v201_v51  ;;  %v170_v3 = vmul.f32 0.0078125, %v122_v59 }
  0xc1   :  { %v169_v4 = vmul.f32 0.0078125, %v120_v62  ;;  %v292_v8 = vmul.f32 %v260_v58, %v540_v12  ;;  %396 = vrsqrt.f32 %v200_v54 }
  0xc2   :  { %v387_v6 = vpop.eup %386  ;;  %v291_v9 = vmul.f32 %v259_v63, %v542_v13  ;;  %v203_v7 = vmax.f32 %v170_v3, 1e-16 }
  0xc3   :  { %v202_v10 = vmax.f32 %v169_v4, 1e-16  ;;  %v389_v11 = vpop.eup %388  ;;  %324 = vst [vmem:[#allocation6 + $0x38] sm:$0xff] %v292_v8  ;;  %v262_v14 = vmul.f32 %v387_v6, %v647_v42  ;;  %v126_v15 = vpop.xlane.xlu1 %125 }
  0xc4   :  { %v124_v18 = vpop.xlane.xlu0 %123  ;;  %323 = vst [vmem:[#allocation6 + $0x30] sm:$0xff] %v291_v9  ;;  %v261_v19 = vmul.f32 %v389_v11, %v647_v42  ;;  %398 = vrsqrt.f32 %v203_v7  ;;  %v172_v22 = vmul.f32 0.0078125, %v126_v15 }
  0xc5   :  { %v171_v23 = vmul.f32 0.0078125, %v124_v18  ;;  %v294_v12 = vmul.f32 %v262_v14, %v548_v16  ;;  %400 = vrsqrt.f32 %v202_v10 }
  0xc6   :  { %v391_v26 = vpop.eup %390  ;;  %v293_v13 = vmul.f32 %v261_v19, %v550_v17  ;;  %v205_v0 = vmax.f32 %v172_v22, 1e-16 }
  0xc7   :  { %v204_v27 = vmax.f32 %v171_v23, 1e-16  ;;  %v393_v1 = vpop.eup %392  ;;  %326 = vst [vmem:[#allocation6 + $0x48] sm:$0xff] %v294_v12  ;;  %v264_v30 = vmul.f32 %v391_v26, %v647_v42  ;;  %v130_v31 = vpop.xlane.xlu1 %129 }
  0xc8   :  { %v128_v34 = vpop.xlane.xlu0 %127  ;;  %325 = vst [vmem:[#allocation6 + $0x40] sm:$0xff] %v293_v13  ;;  %v263_v35 = vmul.f32 %v393_v1, %v647_v42  ;;  %402 = vrsqrt.f32 %v205_v0  ;;  %v174_v38 = vmul.f32 0.0078125, %v130_v31 }
  0xc9   :  { %v173_v39 = vmul.f32 0.0078125, %v128_v34  ;;  %v296_v16 = vmul.f32 %v264_v30, %v556_v20  ;;  %404 = vrsqrt.f32 %v204_v27 }
  0xca   :  { %v395_v43 = vpop.eup %394  ;;  %v295_v17 = vmul.f32 %v263_v35, %v558_v21  ;;  %v207_v46 = vmax.f32 %v174_v38, 1e-16 }
  0xcb   :  { %v206_v47 = vmax.f32 %v173_v39, 1e-16  ;;  %v397_v2 = vpop.eup %396  ;;  %328 = vst [vmem:[#allocation6 + $0x58] sm:$0xff] %v296_v16  ;;  %v266_v50 = vmul.f32 %v395_v43, %v647_v42  ;;  %v134_v5 = vpop.xlane.xlu1 %133 }
  0xcc   :  { %v132_v51 = vpop.xlane.xlu0 %131  ;;  %327 = vst [vmem:[#allocation6 + $0x50] sm:$0xff] %v295_v17  ;;  %v265_v54 = vmul.f32 %v397_v2, %v647_v42  ;;  %406 = vrsqrt.f32 %v207_v46  ;;  %v176_v55 = vmul.f32 0.0078125, %v134_v5 }
  0xcd   :  { %v175_v58 = vmul.f32 0.0078125, %v132_v51  ;;  %v298_v20 = vmul.f32 %v266_v50, %v564_v24  ;;  %408 = vrsqrt.f32 %v206_v47 }
  0xce   :  { %v399_v59 = vpop.eup %398  ;;  %v297_v21 = vmul.f32 %v265_v54, %v566_v25  ;;  %v209_v62 = vmax.f32 %v176_v55, 1e-16 }
  0xcf   :  { %v208_v63 = vmax.f32 %v175_v58, 1e-16  ;;  %v401_v3 = vpop.eup %400  ;;  %330 = vst [vmem:[#allocation6 + $0x68] sm:$0xff] %v298_v20  ;;  %v268_v4 = vmul.f32 %v399_v59, %v647_v42  ;;  %v138_v8 = vpop.xlane.xlu1 %137 }
  0xd0   :  { %v136_v6 = vpop.xlane.xlu0 %135  ;;  %329 = vst [vmem:[#allocation6 + $0x60] sm:$0xff] %v297_v21  ;;  %v267_v9 = vmul.f32 %v401_v3, %v647_v42  ;;  %410 = vrsqrt.f32 %v209_v62  ;;  %v178_v7 = vmul.f32 0.0078125, %v138_v8 }
  0xd1   :  { %v177_v10 = vmul.f32 0.0078125, %v136_v6  ;;  %v300_v24 = vmul.f32 %v268_v4, %v572_v28  ;;  %412 = vrsqrt.f32 %v208_v63 }
  0xd2   :  { %v403_v11 = vpop.eup %402  ;;  %v299_v25 = vmul.f32 %v267_v9, %v574_v29  ;;  %v211_v14 = vmax.f32 %v178_v7, 1e-16 }
  0xd3   :  { %v210_v15 = vmax.f32 %v177_v10, 1e-16  ;;  %v405_v18 = vpop.eup %404  ;;  %332 = vst [vmem:[#allocation6 + $0x78] sm:$0xff] %v300_v24  ;;  %v270_v19 = vmul.f32 %v403_v11, %v647_v42  ;;  %v142_v22 = vpop.xlane.xlu1 %141 }
  0xd4   :  { %v140_v23 = vpop.xlane.xlu0 %139  ;;  %331 = vst [vmem:[#allocation6 + $0x70] sm:$0xff] %v299_v25  ;;  %v269_v12 = vmul.f32 %v405_v18, %v647_v42  ;;  %414 = vrsqrt.f32 %v211_v14  ;;  %v180_v26 = vmul.f32 0.0078125, %v142_v22 }
  0xd5   :  { %v179_v13 = vmul.f32 0.0078125, %v140_v23  ;;  %v302_v28 = vmul.f32 %v270_v19, %v580_v32  ;;  %416 = vrsqrt.f32 %v210_v15 }
  0xd6   :  { %v407_v0 = vpop.eup %406  ;;  %v301_v29 = vmul.f32 %v269_v12, %v582_v33  ;;  %v213_v27 = vmax.f32 %v180_v26, 1e-16 }
  0xd7   :  { %v212_v1 = vmax.f32 %v179_v13, 1e-16  ;;  %v409_v30 = vpop.eup %408  ;;  %334 = vst [vmem:[#allocation6 + $0x88] sm:$0xff] %v302_v28  ;;  %v272_v31 = vmul.f32 %v407_v0, %v647_v42  ;;  %v146_v34 = vpop.xlane.xlu1 %145 }
  0xd8   :  { %v144_v35 = vpop.xlane.xlu0 %143  ;;  %333 = vst [vmem:[#allocation6 + $0x80] sm:$0xff] %v301_v29  ;;  %v271_v38 = vmul.f32 %v409_v30, %v647_v42  ;;  %418 = vrsqrt.f32 %v213_v27  ;;  %v182_v39 = vmul.f32 0.0078125, %v146_v34 }
  0xd9   :  { %v181_v16 = vmul.f32 0.0078125, %v144_v35  ;;  %v304_v32 = vmul.f32 %v272_v31, %v588_v36  ;;  %420 = vrsqrt.f32 %v212_v1 }
  0xda   :  { %v411_v43 = vpop.eup %410  ;;  %v303_v33 = vmul.f32 %v271_v38, %v590_v37  ;;  %v215_v17 = vmax.f32 %v182_v39, 1e-16 }
  0xdb   :  { %v214_v46 = vmax.f32 %v181_v16, 1e-16  ;;  %v413_v47 = vpop.eup %412  ;;  %336 = vst [vmem:[#allocation6 + $0x98] sm:$0xff] %v304_v32  ;;  %v274_v2 = vmul.f32 %v411_v43, %v647_v42  ;;  %v150_v50 = vpop.xlane.xlu1 %149 }
  0xdc   :  { %v148_v5 = vpop.xlane.xlu0 %147  ;;  %335 = vst [vmem:[#allocation6 + $0x90] sm:$0xff] %v303_v33  ;;  %v273_v51 = vmul.f32 %v413_v47, %v647_v42  ;;  %422 = vrsqrt.f32 %v215_v17  ;;  %v184_v54 = vmul.f32 0.0078125, %v150_v50 }
  0xdd   :  { %v183_v55 = vmul.f32 0.0078125, %v148_v5  ;;  %v306_v36 = vmul.f32 %v274_v2, %v596_v40  ;;  %424 = vrsqrt.f32 %v214_v46 }
  0xde   :  { %v415_v58 = vpop.eup %414  ;;  %v305_v37 = vmul.f32 %v273_v51, %v598_v41  ;;  %v217_v20 = vmax.f32 %v184_v54, 1e-16 }
  0xdf   :  { %v216_v59 = vmax.f32 %v183_v55, 1e-16  ;;  %v417_v21 = vpop.eup %416  ;;  %338 = vst [vmem:[#allocation6 + $0xa8] sm:$0xff] %v306_v36  ;;  %v276_v62 = vmul.f32 %v415_v58, %v647_v42  ;;  %v154_v63 = vpop.xlane.xlu1 %153 }
  0xe0   :  { %v152_v3 = vpop.xlane.xlu0 %151  ;;  %337 = vst [vmem:[#allocation6 + $0xa0] sm:$0xff] %v305_v37  ;;  %v275_v4 = vmul.f32 %v417_v21, %v647_v42  ;;  %426 = vrsqrt.f32 %v217_v20  ;;  %v186_v8 = vmul.f32 0.0078125, %v154_v63 }
  0xe1   :  { %v185_v6 = vmul.f32 0.0078125, %v152_v3  ;;  %v308_v40 = vmul.f32 %v276_v62, %v604_v44  ;;  %428 = vrsqrt.f32 %v216_v59 }
  0xe2   :  { %v419_v9 = vpop.eup %418  ;;  %v307_v41 = vmul.f32 %v275_v4, %v606_v45  ;;  %v219_v7 = vmax.f32 %v186_v8, 1e-16 }
  0xe3   :  { %v218_v10 = vmax.f32 %v185_v6, 1e-16  ;;  %v421_v24 = vpop.eup %420  ;;  %340 = vst [vmem:[#allocation6 + $0xb8] sm:$0xff] %v308_v40  ;;  %v278_v11 = vmul.f32 %v419_v9, %v647_v42 }
  0xe4   :  { %339 = vst [vmem:[#allocation6 + $0xb0] sm:$0xff] %v307_v41  ;;  %v277_v25 = vmul.f32 %v421_v24, %v647_v42  ;;  %430 = vrsqrt.f32 %v219_v7 }
  0xe5   :  { %v310_v14 = vmul.f32 %v278_v11, %v612_v48  ;;  %432 = vrsqrt.f32 %v218_v10 }
  0xe6   :  { %v423_v15 = vpop.eup %422  ;;  %v309_v44 = vmul.f32 %v277_v25, %v614_v49 }
  0xe7   :  { %v425_v18 = vpop.eup %424  ;;  %342 = vst [vmem:[#allocation6 + $0xc8] sm:$0xff] %v310_v14  ;;  %v280_v45 = vmul.f32 %v423_v15, %v647_v42 }
  0xe8   :  { %341 = vst [vmem:[#allocation6 + $0xc0] sm:$0xff] %v309_v44  ;;  %v279_v19 = vmul.f32 %v425_v18, %v647_v42 }
  0xe9   :  { %v312_v22 = vmul.f32 %v280_v45, %v620_v52 }
  0xea   :  { %v427_v23 = vpop.eup %426  ;;  %v311_v12 = vmul.f32 %v279_v19, %v622_v53 }
  0xeb   :  { %v429_v26 = vpop.eup %428  ;;  %344 = vst [vmem:[#allocation6 + $0xd8] sm:$0xff] %v312_v22  ;;  %v282_v48 = vmul.f32 %v427_v23, %v647_v42 }
  0xec   :  { %343 = vst [vmem:[#allocation6 + $0xd0] sm:$0xff] %v311_v12  ;;  %v281_v13 = vmul.f32 %v429_v26, %v647_v42 }
  0xed   :  { %v314_v49 = vmul.f32 %v282_v48, %v628_v56 }
  0xee   :  { %v431_v28 = vpop.eup %430  ;;  %v313_v0 = vmul.f32 %v281_v13, %v630_v57 }
  0xef   :  { %v433_v29 = vpop.eup %432  ;;  %346 = vst [vmem:[#allocation6 + $0xe8] sm:$0xff] %v314_v49  ;;  %v284_v27 = vmul.f32 %v431_v28, %v647_v42 }
  0xf0   :  { %345 = vst [vmem:[#allocation6 + $0xe0] sm:$0xff] %v313_v0  ;;  %v283_v52 = vmul.f32 %v433_v29, %v647_v42 }
  0xf1   :  { %v316_v53 = vmul.f32 %v284_v27, %v636_v60 }
  0xf2   :  { %v315_v1 = vmul.f32 %v283_v52, %v638_v61 }
  0xf3   :  { %348 = vst [vmem:[#allocation6 + $0xf8] sm:$0xff] %v316_v53 }
  0xf4   :  { %347 = vst [vmem:[#allocation6 + $0xf0] sm:$0xff] %v315_v1 }
  0xf5   :  { %467 = shalt.err (!%p464_p12)
}
  0xf6   :  { %s468_s28 = scalar_lea.hbm %s730_s2, 4096 }
  0xf7   :  { %p469_p13 = scmp.ne.s32.totalorder %s730_s2, %s468_s28  ;;  %p472_p0 = scmp.lt.u32.totalorder %s468_s28, %s730_s2 }
  0xf9   :  { %p474_p1 = pnand %p472_p0, %p469_p13 }
  0xfb   :  { %477 = shalt.err (!%p474_p1)
}
  0xfc   :  { %360 = dma.vmem_to_hbm [thread:$0]  %s355_s24, 4096, %s730_s2, [#allocation5], %s483_s19, %s483_s19, %s484_s20  }
  0xfd   :  { %480 = dma.done.wait [#allocation5], 4096  }
  0xfe   :  { %481 = vsyncadd [#allocation5], 4294963200 }
  0xff   :  { %364 = vsyncpa [#allocation4], 1 }
 0x100   :  { %365 = vsyncpa [#allocation5], 1 }

</bundles_post_ra>
